<compile_context>
chip_gen: v7x
topology: tpu7x:2x2x1
jax: 0.10.0
libtpu: 0.0.40
codegen_flags: <defaults>
</compile_context>

<pallas_src>
import functools
import math

import jax
import jax.numpy as jnp
from jax.experimental import pallas as pl
from jax.experimental.pallas import tpu as pltpu

_LANES = 128


def _zeros_inputs_kernel(x_ref, bits_ref, o_ref, *, keep_threshold):
    x = x_ref[...]
    # kept <=> (uniform u32 < thr) AND (x != 0); everything else becomes -1,
    # which reproduces `y = x * mask; y[y == 0] = -1`.
    kept = (bits_ref[...] < jnp.uint32(keep_threshold)) & (x != 0)
    o_ref[...] = jnp.where(kept, x, jnp.full_like(x, -1.0))


def _pick_tile_rows(rows, max_rows=2048):
    """Largest power-of-two row tile (multiple of 8) dividing `rows`, <= cap."""
    if rows <= max_rows:
        return rows
    tr = max_rows
    while tr >= 8:
        if rows % tr == 0:
            return tr
        tr //= 2
    return rows  # awkward size: fall back to a single block covering the slab


def zeros_inputs(x, key, *, sigma=0.3, training=True):
    """JAX/Pallas equivalent of ZerosInputs.forward."""
    if (not training) or sigma == 0:
        # eval mode / sigma == 0 is the identity in the PyTorch module.
        return x

    orig_shape = x.shape
    total = x.size
    assert total % _LANES == 0, "example keeps sizes a multiple of 128 lanes"
    rows = total // _LANES
    x2 = x.reshape(rows, _LANES)

    # Uniform u32 bits, one per element (unique per element, so tiling the grid
    # cannot correlate the dropout pattern across blocks).
    bits = jax.random.bits(key, (rows, _LANES), dtype=jnp.uint32)

    # keep prob = P(N(0,1) >= sigma) = 0.5 * erfc(sigma / sqrt(2))
    p_keep = 0.5 * math.erfc(float(sigma) / math.sqrt(2.0))
    keep_threshold = min(max(int(p_keep * (2 ** 32)), 0), 2 ** 32 - 1)

    tr = _pick_tile_rows(rows)
    grid = (rows // tr,)

    kernel = functools.partial(_zeros_inputs_kernel,
                               keep_threshold=keep_threshold)

    out = pl.pallas_call(
        kernel,
        out_shape=jax.ShapeDtypeStruct((rows, _LANES), x.dtype),
        grid=grid,
        in_specs=[
            pl.BlockSpec((tr, _LANES), lambda i: (i, 0)),
            pl.BlockSpec((tr, _LANES), lambda i: (i, 0)),
        ],
        out_specs=pl.BlockSpec((tr, _LANES), lambda i: (i, 0)),
        compiler_params=pltpu.CompilerParams(
            dimension_semantics=("parallel",)),
    )(x2, bits)

    return out.reshape(orig_shape)


if __name__ == "__main__":
    key = jax.random.PRNGKey(0)
    kx, knoise = jax.random.split(key)

    # NCHW input, small shapes: batch=2, channels=4, spatial=16x16.
    x = jax.random.normal(kx, (2, 4, 16, 16), dtype=jnp.float32)

    y = zeros_inputs(x, knoise, sigma=0.3, training=True)
    y = jax.block_until_ready(y)

    # Sanity checks: every output element is either -1 (dropped / zero) or
    # exactly the corresponding input element.
    kept = (y == x)
    dropped = (y == -1.0)
    assert y.shape == x.shape and y.dtype == x.dtype
    assert bool(jnp.all(kept | dropped))
    # With sigma=0.3, keep prob = 1 - Phi(0.3) ~ 0.38: both branches occur.
    assert bool(jnp.any(kept)) and bool(jnp.any(dropped))
    frac_kept = float(jnp.mean(kept.astype(jnp.float32)))
    assert 0.2 < frac_kept < 0.6, frac_kept

    # Eval-mode path is identity.
    y_eval = jax.block_until_ready(zeros_inputs(x, knoise, training=False))
    assert bool(jnp.all(y_eval == x))

    print("KERNEL_OK")
</pallas_src>

<mosaic_0001>
module attributes {stable_mosaic.version = 11 : i64} {
  func.func @_zeros_inputs_kernel(%arg0: i32, %arg1: memref<16x128xf32, #tpu.memory_space<vmem>>, %arg2: memref<16x128xi32, #tpu.memory_space<vmem>>, %arg3: memref<16x128xf32, #tpu.memory_space<vmem>>) attributes {dimension_semantics = [#tpu.dimension_semantics<parallel>], iteration_bounds = array<i64: 1>, scalar_prefetch = 0 : i64, scratch_operands = 0 : i64, tpu.core_type = #tpu.core_type<tc>, window_params = [{transform_indices = @transform_0, window_bounds = array<i64: 16, 128>}, {transform_indices = @transform_1, window_bounds = array<i64: 16, 128>}, {transform_indices = @transform_2, window_bounds = array<i64: 16, 128>}]} {
    %c0 = arith.constant 0 : index
    %c0_0 = arith.constant 0 : index
    %0 = vector.load %arg1[%c0, %c0_0] : memref<16x128xf32, #tpu.memory_space<vmem>>, vector<16x128xf32>
    %c0_1 = arith.constant 0 : index
    %c0_2 = arith.constant 0 : index
    %1 = vector.load %arg2[%c0_1, %c0_2] : memref<16x128xi32, #tpu.memory_space<vmem>>, vector<16x128xi32>
    %c1641057945_i32 = arith.constant 1641057945 : i32
    %2 = vector.broadcast %c1641057945_i32 : i32 to vector<16x128xi32>
    %3 = arith.cmpi ult, %1, %2 : vector<16x128xi32>
    %cst = arith.constant 0.000000e+00 : f32
    %4 = vector.broadcast %cst : f32 to vector<16x128xf32>
    %5 = arith.cmpf one, %0, %4 : vector<16x128xf32>
    %6 = arith.andi %3, %5 : vector<16x128xi1>
    %cst_3 = arith.constant -1.000000e+00 : f32
    %7 = vector.broadcast %cst_3 : f32 to vector<16x128xf32>
    %8 = arith.select %6, %0, %7 : vector<16x128xi1>, vector<16x128xf32>
    %c0_4 = arith.constant 0 : index
    %c0_5 = arith.constant 0 : index
    %9 = vector.load %arg3[%c0_4, %c0_5] : memref<16x128xf32, #tpu.memory_space<vmem>>, vector<16x128xf32>
    tpu.vector_store %arg3[%c0_4, %c0_5], %8 {strides = array<i32>} : memref<16x128xf32, #tpu.memory_space<vmem>>, vector<16x128xf32>,
    return
  }
  func.func @transform_0(%arg0: i32) -> (i32, i32) {
    %c0_i32 = arith.constant 0 : i32
    %c0_i32_0 = arith.constant 0 : i32
    return %arg0, %c0_i32 : i32, i32
  }
  func.func @transform_1(%arg0: i32) -> (i32, i32) {
    %c0_i32 = arith.constant 0 : i32
    %c0_i32_0 = arith.constant 0 : i32
    return %arg0, %c0_i32 : i32, i32
  }
  func.func @transform_2(%arg0: i32) -> (i32, i32) {
    %c0_i32 = arith.constant 0 : i32
    %c0_i32_0 = arith.constant 0 : i32
    return %arg0, %c0_i32 : i32, i32
  }
}

</mosaic_0001>

<bundles_post_ra>
// kernel: tpu_custom_call.1
= control target key start
LH: loop header
LB: loop body
LE: loop exit
PB: predicated region body
PF: predicated region fallthrough
CT: control target
= control target key end

     0   :  { %7 = vsyncpa [#allocation3], 0  ;;  %s214_s0 = inlined_call_operand.hbm [shape: f32[16,128], index: 0, kind: input, shape index: {}]   ;;  %s215_s1 = inlined_call_operand.hbm [shape: u32[16,128], index: 1, kind: input, shape index: {}]   ;;  %s216_s2 = inlined_call_operand.hbm [shape: f32[16,128], index: 2, kind: output, shape index: {}]  }
   0x1   :  { %8 = vsyncpa [#allocation6], 0 }
   0x2   :  { %9 = vsyncpa [#allocation4], 0  ;;  %s149_s9 = smov [#allocation2]   ;;  %s77_s13 = scalar_lea.hbm %s214_s0, 256 }
   0x3   :  { %s15_s10 = sshll.u32 %s149_s9, 4  ;;  %p78_p0 = scmp.ne.s32.totalorder %s214_s0, %s77_s13  ;;  %s16_s10 = int_to_ptr.vmem [resolvable:$true] %s15_s10 }
   0x4   :  { %p81_p1 = scmp.lt.u32.totalorder %s77_s13, %s214_s0 }
   0x6   :  { %p83_p2 = pnand %p81_p1, %p78_p0 }
   0x8   :  { %86 = shalt.err (!%p83_p2)
}
   0x9   :  { %s87_s18 = scalar_lea.vmem %s16_s10, 256  ;;  %p92_p4 = scmp.lt.s32.totalorder %s16_s10, %s16_s10 }
   0xa   :  { %p88_p3 = scmp.ne.s32.totalorder %s16_s10, %s87_s18  ;;  %p93_p5 = scmp.lt.s32.totalorder %s87_s18, %s87_s18 }
   0xc   :  { %p94_p6 = por %p93_p5, %p92_p4 }
   0xe   :  { %p95_p7 = pnand %p94_p6, %p88_p3 }
  0x10   :  { %98 = shalt.err (!%p95_p7)
}
  0x11   :  { %s150_s19 = smov 128   ;;  %s151_s20 = smov 8  }
  0x12   :  { %21 = dma.hbm_to_vmem [thread:$0]  %s214_s0, 256, %s16_s10, [#allocation3], %s150_s19, %s150_s19, %s151_s20  }
  0x13   :  { %s152_s23 = smov [#allocation5]   ;;  %s99_s27 = scalar_lea.hbm %s215_s1, 256 }
  0x14   :  { %s27_s24 = sshll.u32 %s152_s23, 4  ;;  %p100_p8 = scmp.ne.s32.totalorder %s215_s1, %s99_s27  ;;  %s28_s24 = int_to_ptr.vmem [resolvable:$true] %s27_s24 }
  0x15   :  { %p103_p9 = scmp.lt.u32.totalorder %s99_s27, %s215_s1 }
  0x17   :  { %p105_p10 = pnand %p103_p9, %p100_p8 }
  0x19   :  { %108 = shalt.err (!%p105_p10)
}
  0x1a   :  { %s109_s4 = scalar_lea.vmem %s28_s24, 256  ;;  %p114_p12 = scmp.lt.s32.totalorder %s28_s24, %s28_s24 }
  0x1b   :  { %p110_p11 = scmp.ne.s32.totalorder %s28_s24, %s109_s4  ;;  %p115_p13 = scmp.lt.s32.totalorder %s109_s4, %s109_s4 }
  0x1d   :  { %p116_p0 = por %p115_p13, %p114_p12 }
  0x1f   :  { %p117_p1 = pnand %p116_p0, %p110_p11 }
  0x21   :  { %120 = shalt.err (!%p117_p1)
}
  0x22   :  { %33 = dma.hbm_to_vmem [thread:$0]  %s215_s1, 256, %s28_s24, [#allocation6], %s150_s19, %s150_s19, %s151_s20  }
  0x23   :  { %143 = dma.done.wait [#allocation3], 256  }
  0x24   :  { %144 = vsyncadd [#allocation3], 4294967040 }
  0x25   :  { %145 = dma.done.wait [#allocation6], 256  }
  0x26   :  { %146 = vsyncadd [#allocation6], 4294967040  ;;  %v40_v0 = vld [vmem:[#allocation2] sm:$0xff]  ;;  %v42_v1 = vld [vmem:[#allocation5] sm:$0xff]  ;;  %s153_s6 = smov [#allocation7]  }
  0x27   :  { %v41_v2 = vld [vmem:[#allocation2 + $0x8] sm:$0xff]  ;;  %s59_s7 = sshll.u32 %s153_s6, 4  ;;  %vm44_vm0 = vcmp.lt.u32.totalorder %v42_v1, 1641057945  ;;  %vm46_vm1 = vcmp.ne.f32.partialorder %v40_v0, 0.0  ;;  %v43_v3 = vld [vmem:[#allocation5 + $0x8] sm:$0xff]  ;;  %s60_s7 = int_to_ptr.vmem [resolvable:$true] %s59_s7 }
  0x28   :  { %vm47_vm2 = vcmp.ne.f32.partialorder %v41_v2, 0.0  ;;  %vm48_vm3 = vmand %vm44_vm0, %vm46_vm1  ;;  %vm45_vm4 = vcmp.lt.u32.totalorder %v43_v3, 1641057945  ;;  %s121_s1 = scalar_lea.vmem %s60_s7, 256  ;;  %p126_p3 = scmp.lt.s32.totalorder %s60_s7, %s60_s7 }
  0x29   :  { %v50_v4 = vsel %vm48_vm3, %v40_v0, -1.0  ;;  %vm49_vm5 = vmand %vm45_vm4, %vm47_vm2  ;;  %p122_p2 = scmp.ne.s32.totalorder %s60_s7, %s121_s1  ;;  %p127_p4 = scmp.lt.s32.totalorder %s121_s1, %s121_s1 }
  0x2a   :  { %52 = vst [vmem:[#allocation7] sm:$0xff] %v50_v4  ;;  %v51_v5 = vsel %vm49_vm5, %v41_v2, -1.0 }
  0x2b   :  { %53 = vst [vmem:[#allocation7 + $0x8] sm:$0xff] %v51_v5  ;;  %p128_p5 = por %p127_p4, %p126_p3 }
  0x2d   :  { %p129_p6 = pnand %p128_p5, %p122_p2 }
  0x2f   :  { %132 = shalt.err (!%p129_p6)
}
  0x30   :  { %s133_s10 = scalar_lea.hbm %s216_s2, 256 }
  0x31   :  { %p134_p7 = scmp.ne.s32.totalorder %s216_s2, %s133_s10  ;;  %p137_p8 = scmp.lt.u32.totalorder %s133_s10, %s216_s2 }
  0x33   :  { %p139_p9 = pnand %p137_p8, %p134_p7 }
  0x35   :  { %142 = shalt.err (!%p139_p9)
}
  0x36   :  { %65 = dma.vmem_to_hbm [thread:$0]  %s60_s7, 256, %s216_s2, [#allocation4], %s150_s19, %s150_s19, %s151_s20  }
  0x37   :  { %147 = dma.done.wait [#allocation4], 256  }
  0x38   :  { %148 = vsyncadd [#allocation4], 4294967040 }
  0x39   :  { %69 = vsyncpa [#allocation3], 1 }
  0x3a   :  { %70 = vsyncpa [#allocation6], 1 }
  0x3b   :  { %71 = vsyncpa [#allocation4], 1 }

</bundles_post_ra>
